<compile_context>
chip_gen: v7x
topology: tpu7x:2x2x1
jax: 0.10.0
libtpu: 0.0.40
codegen_flags: <defaults>
</compile_context>

<pallas_src>
import functools

import jax
import jax.numpy as jnp
from jax.experimental import pallas as pl
from jax.experimental.pallas import tpu as pltpu

NUM_GROUPS = 32
EPS = 1e-6
# Below v7x's 64 MiB physical VMEM per TensorCore, above the v5e/v6e default
# scoped limits (16 / 32 MiB).
VMEM_LIMIT_BYTES = 48 * 1024 * 1024


# --------------------------------------------------------------------------
# pass 1: GroupNorm statistics (per-channel sum / sum-of-squares over L)
# Works directly on the NCHW (spatial-flattened) layout -> no input transpose.
# --------------------------------------------------------------------------
def _gn_stats_kernel(x_ref, sum_ref, sq_ref):
    """x_ref: (C, TL) tile of one batch element.
    sum_ref / sq_ref: (C, 1) per-channel accumulators, resident across the
    spatial grid axis."""
    @pl.when(pl.program_id(1) == 0)
    def _():
        sum_ref[...] = jnp.zeros(sum_ref.shape, jnp.float32)
        sq_ref[...] = jnp.zeros(sq_ref.shape, jnp.float32)

    x = x_ref[...].astype(jnp.float32)
    sum_ref[...] += jnp.sum(x, axis=1, keepdims=True)
    sq_ref[...] += jnp.sum(x * x, axis=1, keepdims=True)


# --------------------------------------------------------------------------
# pass 2: GroupNorm apply + Q / K^T / V projection (hoisted out of the
#         flash grid so the KV path is projected exactly once)
# --------------------------------------------------------------------------
def _qkv_project_kernel(x_ref, scale_ref, shift_ref,
                        wq_ref, wk_ref, wv_ref, bq_ref, bk_ref, bv_ref,
                        q_ref, kt_ref, v_ref):
    """One grid step = (batch n, spatial tile l).

    x_ref        : (C, TL) raw NCHW tile
    scale/shift  : (C, 1) fused per-(batch,channel) GroupNorm scale / shift
    wq_ref       : (C, C) bf16 right-multiply Q weight (Wq^T, pre-scaled 1/sqrt(C))
    wk_ref       : (C, C) bf16 left-multiply K weight (PyTorch Wk as-is -> K^T)
    wv_ref       : (C, C) bf16 right-multiply V weight (Wv^T)
    bq/bv        : (1, C) f32 ; bk : (C, 1) f32 (bq pre-scaled by 1/sqrt(C))
    q_ref, v_ref : (TL, C) bf16 outputs ; kt_ref : (C, TL) bf16 output
    """
    x_t = x_ref[...].astype(jnp.float32)                       # (C, TL)
    xn_t = x_t * scale_ref[...] + shift_ref[...]               # (C, TL) normed
    xn_t_bf = xn_t.astype(jnp.bfloat16)
    xn_bf = xn_t.T.astype(jnp.bfloat16)                        # (TL, C), one XLU
                                                               # transpose / tile
    # K^T directly in (C, TL): Wk @ xn^T  (plain MXU matmul).
    kt = jnp.dot(wk_ref[...], xn_t_bf,
                 preferred_element_type=jnp.float32) + bk_ref[...]
    # Q (scale already folded in) and V in (TL, C).
    q = jnp.dot(xn_bf, wq_ref[...],
                preferred_element_type=jnp.float32) + bq_ref[...]
    v = jnp.dot(xn_bf, wv_ref[...],
                preferred_element_type=jnp.float32) + bv_ref[...]

    kt_ref[...] = kt.astype(jnp.bfloat16)
    q_ref[...] = q.astype(jnp.bfloat16)
    v_ref[...] = v.astype(jnp.bfloat16)


# --------------------------------------------------------------------------
# pass 3: flash attention (VMEM-resident K^T / V) + output proj + residual
# --------------------------------------------------------------------------
def _flash_attn_kernel(q_ref, kt_ref, v_ref, xres_ref, wo_ref, bo_ref,
                       o_ref, m_sc, l_sc, acc_sc, *, tkv):
    """One grid step = (batch n, query tile qi, key/value tile kv).

    q_ref    : (TQ, C) bf16 precomputed query tile (1/sqrt(d) folded in)
    kt_ref   : (C, L)  bf16 per-batch K^T, VMEM-resident across qi/kv
    v_ref    : (L, C)  bf16 per-batch V,  VMEM-resident across qi/kv
    xres_ref : (C, TQ) f32 raw input tile (residual), NCHW layout
    wo_ref   : (C, C)  bf16 output projection (PyTorch (out,in) layout)
    bo_ref   : (C, 1)  f32
    o_ref    : (C, TQ) output tile, NCHW layout
    m_sc, l_sc, acc_sc : online-softmax running max / sum / unnormalized out
    """
    kv = pl.program_id(2)

    @pl.when(kv == 0)
    def _():
        m_sc[...] = jnp.full(m_sc.shape, -jnp.inf, jnp.float32)
        l_sc[...] = jnp.zeros(l_sc.shape, jnp.float32)
        acc_sc[...] = jnp.zeros(acc_sc.shape, jnp.float32)

    off = pl.multiple_of(kv * tkv, tkv)
    kt = kt_ref[:, pl.ds(off, tkv)]                        # (C, TKV) bf16
    vt = v_ref[pl.ds(off, tkv), :]                         # (TKV, C) bf16

    # scores: plain (TQ,C)x(C,TKV) MXU matmul; K already transposed, already
    # projected -> nothing but the two attention matmuls in the L^2 loop.
    s = jnp.dot(q_ref[...], kt, preferred_element_type=jnp.float32)  # (TQ,TKV)

    # ---- online softmax; normalization deferred to the final step ---------
    m_prev = m_sc[...]
    m_new = jnp.maximum(m_prev, jnp.max(s, axis=-1, keepdims=True))
    alpha = jnp.exp(m_prev - m_new)
    p = jnp.exp(s - m_new)
    l_sc[...] = alpha * l_sc[...] + jnp.sum(p, axis=-1, keepdims=True)
    acc_sc[...] = alpha * acc_sc[...] + jnp.dot(
        p.astype(jnp.bfloat16), vt, preferred_element_type=jnp.float32)
    m_sc[...] = m_new

    # ---- last KV step: normalize, output projection, residual -------------
    @pl.when(kv == pl.num_programs(2) - 1)
    def _():
        inv_l = pl.reciprocal(l_sc[...], approx=True)      # EUP slot, ~free
        attn = (acc_sc[...] * inv_l).astype(jnp.bfloat16)  # (TQ, C)
        # out^T = Wo @ attn^T via an A@B^T dot_general: result lands directly
        # in the NCHW (C, TQ) layout (transpose handled by the MXU, once per
        # q tile, outside the L^2 loop).
        out_t = jax.lax.dot_general(
            wo_ref[...], attn, (((1,), (1,)), ((), ())),
            preferred_element_type=jnp.float32)            # (C, TQ)
        o_ref[...] = (out_t + bo_ref[...] +
                      xres_ref[...].astype(jnp.float32)).astype(o_ref.dtype)


# --------------------------------------------------------------------------
# wrapper
# --------------------------------------------------------------------------
def _pick_tile(length, cap):
    """Largest multiple of 128 that divides `length` and is <= cap; falls back
    to the full extent (always a legal block shape)."""
    t = min(cap, length)
    t -= t % 128
    while t >= 128:
        if length % t == 0:
            return t
        t -= 128
    return length


def encoder_attention_block(x_nchw, params, *, q_tile=512, kv_tile=512,
                            proj_tile=512, stats_tile=1024):
    """x_nchw: (N, C, H, W) float32. Returns (N, C, H, W)."""
    N, C, H, W = x_nchw.shape
    L = H * W
    G = NUM_GROUPS
    assert C % G == 0, "GroupNorm(32, C) requires C % 32 == 0"
    cg = C // G

    # NCHW with spatial flattened: (N, C, L).  No HBM layout transpose is ever
    # materialized: pass 2 transposes each tile on-chip and pass 3 writes its
    # output directly back in (C, L) layout.
    x_ncl = x_nchw.reshape(N, C, L)

    # ---------------- pass 1: GroupNorm statistics (Pallas) ----------------
    tls = _pick_tile(L, stats_tile)
    ch_sum, ch_sq = pl.pallas_call(
        _gn_stats_kernel,
        out_shape=(jax.ShapeDtypeStruct((N, C, 1), jnp.float32),
                   jax.ShapeDtypeStruct((N, C, 1), jnp.float32)),
        grid=(N, L // tls),
        in_specs=[pl.BlockSpec((pl.Squeezed(), C, tls),
                               lambda n, l: (n, 0, l))],
        out_specs=(pl.BlockSpec((pl.Squeezed(), C, 1), lambda n, l: (n, 0, 0)),
                   pl.BlockSpec((pl.Squeezed(), C, 1), lambda n, l: (n, 0, 0))),
        compiler_params=pltpu.CompilerParams(
            dimension_semantics=("parallel", "arbitrary")),
    )(x_ncl)

    # Tiny O(N*C) finalize: fold group stats + GroupNorm affine into a
    # per-(batch, channel) scale/shift (plain XLA).
    n_elem = jnp.float32(L * cg)
    grp_sum = ch_sum.reshape(N, G, cg).sum(axis=-1)
    grp_sq = ch_sq.reshape(N, G, cg).sum(axis=-1)
    mean_g = grp_sum / n_elem
    var_g = jnp.maximum(grp_sq / n_elem - mean_g * mean_g, 0.0)
    inv_g = jax.lax.rsqrt(var_g + EPS)
    mean_c = jnp.repeat(mean_g, cg, axis=1)                     # (N, C)
    inv_c = jnp.repeat(inv_g, cg, axis=1)                       # (N, C)
    gamma = params["gn_gamma"].astype(jnp.float32)[None, :]     # (1, C)
    beta = params["gn_beta"].astype(jnp.float32)[None, :]
    gn_scale = (inv_c * gamma).reshape(N, C, 1)
    gn_shift = (beta - mean_c * inv_c * gamma).reshape(N, C, 1)

    # -------- weights: split in_proj, fold 1/sqrt(d) into Q, cast bf16 -----
    w_in = params["in_proj_w"]                   # (3C, C) PyTorch Linear layout
    b_in = params["in_proj_b"]                   # (3C,)
    inv_sqrt_d = 1.0 / jnp.sqrt(jnp.float32(C))  # 1 head -> d_head = C
    wq_r = (w_in[0 * C:1 * C].T * inv_sqrt_d).astype(jnp.bfloat16)  # right-mult
    wk_l = w_in[1 * C:2 * C].astype(jnp.bfloat16)                    # left-mult
    wv_r = w_in[2 * C:3 * C].T.astype(jnp.bfloat16)                  # right-mult
    bq = (b_in[0 * C:1 * C] * inv_sqrt_d).reshape(1, C).astype(jnp.float32)
    bk = b_in[1 * C:2 * C].reshape(C, 1).astype(jnp.float32)
    bv = b_in[2 * C:3 * C].reshape(1, C).astype(jnp.float32)
    wo_l = params["out_proj_w"].astype(jnp.bfloat16)                 # left-mult
    bo = params["out_proj_b"].reshape(C, 1).astype(jnp.float32)

    # ---------------- pass 2: GN apply + Q/K^T/V projection (Pallas) -------
    tl2 = _pick_tile(L, proj_tile)
    const2 = lambda n, l: (0, 0)
    q_all, kt_all, v_all = pl.pallas_call(
        _qkv_project_kernel,
        out_shape=(jax.ShapeDtypeStruct((N, L, C), jnp.bfloat16),   # Q
                   jax.ShapeDtypeStruct((N, C, L), jnp.bfloat16),   # K^T
                   jax.ShapeDtypeStruct((N, L, C), jnp.bfloat16)),  # V
        grid=(N, L // tl2),
        in_specs=[
            pl.BlockSpec((pl.Squeezed(), C, tl2), lambda n, l: (n, 0, l)),  # x
            pl.BlockSpec((pl.Squeezed(), C, 1), lambda n, l: (n, 0, 0)),    # scale
            pl.BlockSpec((pl.Squeezed(), C, 1), lambda n, l: (n, 0, 0)),    # shift
            pl.BlockSpec((C, C), const2),                                   # wq_r
            pl.BlockSpec((C, C), const2),                                   # wk_l
            pl.BlockSpec((C, C), const2),                                   # wv_r
            pl.BlockSpec((1, C), const2),                                   # bq
            pl.BlockSpec((C, 1), const2),                                   # bk
            pl.BlockSpec((1, C), const2),                                   # bv
        ],
        out_specs=(
            pl.BlockSpec((pl.Squeezed(), tl2, C), lambda n, l: (n, l, 0)),  # Q
            pl.BlockSpec((pl.Squeezed(), C, tl2), lambda n, l: (n, 0, l)),  # K^T
            pl.BlockSpec((pl.Squeezed(), tl2, C), lambda n, l: (n, l, 0)),  # V
        ),
        compiler_params=pltpu.CompilerParams(
            dimension_semantics=("parallel", "parallel"),
            vmem_limit_bytes=VMEM_LIMIT_BYTES),
    )(x_ncl, gn_scale, gn_shift, wq_r, wk_l, wv_r, bq, bk, bv)

    # ---------------- pass 3: flash attention + residual (Pallas) ----------
    tq = _pick_tile(L, q_tile)
    tkv = _pick_tile(L, kv_tile)
    grid = (N, L // tq, L // tkv)
    const3 = lambda n, qi, kv: (0, 0)
    per_batch = lambda n, qi, kv: (n, 0, 0)   # K^T / V resident per batch
    # TODO(synk): for very large L where 2*L*C bf16 per batch exceeds the VMEM
    # budget, fall back to streaming the KV tiles per kv step instead of the
    # per-batch resident BlockSpecs below.
    kernel = functools.partial(_flash_attn_kernel, tkv=tkv)

    out_ncl = pl.pallas_call(
        kernel,
        out_shape=jax.ShapeDtypeStruct((N, C, L), x_nchw.dtype),
        grid=grid,
        in_specs=[
            pl.BlockSpec((pl.Squeezed(), tq, C), lambda n, qi, kv: (n, qi, 0)),  # Q tile
            pl.BlockSpec((pl.Squeezed(), C, L), per_batch),                      # K^T (resident)
            pl.BlockSpec((pl.Squeezed(), L, C), per_batch),                      # V   (resident)
            pl.BlockSpec((pl.Squeezed(), C, tq), lambda n, qi, kv: (n, 0, qi)),  # residual x
            pl.BlockSpec((C, C), const3),                                        # wo
            pl.BlockSpec((C, 1), const3),                                        # bo
        ],
        out_specs=pl.BlockSpec((pl.Squeezed(), C, tq),
                               lambda n, qi, kv: (n, 0, qi)),
        scratch_shapes=[
            pltpu.VMEM((tq, 1), jnp.float32),    # running row max
            pltpu.VMEM((tq, 1), jnp.float32),    # running row sum
            pltpu.VMEM((tq, C), jnp.float32),    # unnormalized output acc
        ],
        compiler_params=pltpu.CompilerParams(
            dimension_semantics=("parallel", "parallel", "arbitrary"),
            vmem_limit_bytes=VMEM_LIMIT_BYTES),
    )(q_all, kt_all, v_all, x_ncl, wo_l, bo)

    return out_ncl.reshape(N, C, H, W)


# --------------------------------------------------------------------------
# reference + test harness
# --------------------------------------------------------------------------
def _reference(x, params):
    """Pure-JAX f32 reference matching the PyTorch forward exactly."""
    N, C, H, W = x.shape
    cg = C // NUM_GROUPS
    xg = x.reshape(N, NUM_GROUPS, cg, H, W)
    mean = jnp.mean(xg, axis=(2, 3, 4), keepdims=True)
    var = jnp.var(xg, axis=(2, 3, 4), keepdims=True)
    xn = (xg - mean) / jnp.sqrt(var + EPS)
    xn = xn.reshape(N, C, H, W)
    xn = xn * params["gn_gamma"][None, :, None, None] + \
        params["gn_beta"][None, :, None, None]

    t = jnp.transpose(xn.reshape(N, C, H * W), (0, 2, 1))       # (N, L, C)
    qkv = t @ params["in_proj_w"].T + params["in_proj_b"]
    q, k, v = jnp.split(qkv, 3, axis=-1)
    s = jnp.einsum("nqc,nkc->nqk", q, k) / jnp.sqrt(jnp.float32(C))
    p = jax.nn.softmax(s, axis=-1)
    o = jnp.einsum("nqk,nkc->nqc", p, v)
    o = o @ params["out_proj_w"].T + params["out_proj_b"]
    o = jnp.transpose(o, (0, 2, 1)).reshape(N, C, H, W)
    return o + x


def _init_params(key, channels):
    ks = jax.random.split(key, 6)
    scale = 0.05
    return {
        "gn_gamma": 1.0 + scale * jax.random.normal(ks[0], (channels,), jnp.float32),
        "gn_beta": scale * jax.random.normal(ks[1], (channels,), jnp.float32),
        "in_proj_w": scale * jax.random.normal(ks[2], (3 * channels, channels), jnp.float32),
        "in_proj_b": scale * jax.random.normal(ks[3], (3 * channels,), jnp.float32),
        "out_proj_w": scale * jax.random.normal(ks[4], (channels, channels), jnp.float32),
        "out_proj_b": scale * jax.random.normal(ks[5], (channels,), jnp.float32),
    }


if __name__ == "__main__":
    key = jax.random.PRNGKey(0)
    kx, kp = jax.random.split(key)

    # Small but TPU-friendly: C multiple of 128 (lane/MXU alignment) and of 32
    # (GroupNorm groups); L = H*W = 256 so that 128-tiles exercise multi-step
    # stats accumulation, multiple projection tiles and the multi-kv-step
    # online-softmax path.
    N, C, H, W = 2, 128, 16, 16
    x = jax.random.normal(kx, (N, C, H, W), jnp.float32)
    params = _init_params(kp, C)

    out = jax.block_until_ready(
        encoder_attention_block(x, params, q_tile=128, kv_tile=128,
                                proj_tile=128, stats_tile=128))
    ref = jax.block_until_ready(_reference(x, params))

    assert out.shape == x.shape and out.dtype == x.dtype
    max_err = float(jnp.max(jnp.abs(out - ref)))
    # bf16 MXU operands (f32 accumulation) -> looser tolerance than pure f32.
    assert jnp.allclose(out, ref, atol=2e-2, rtol=2e-2), max_err
    print("KERNEL_OK")
</pallas_src>

<mosaic_0001>
module attributes {stable_mosaic.version = 11 : i64} {
  func.func @_gn_stats_kernel(%arg0: i32, %arg1: i32, %arg2: memref<1x128x128xf32, #tpu.memory_space<vmem>>, %arg3: memref<1x128x1xf32, #tpu.memory_space<vmem>>, %arg4: memref<1x128x1xf32, #tpu.memory_space<vmem>>) attributes {dimension_semantics = [#tpu.dimension_semantics<parallel>, #tpu.dimension_semantics<arbitrary>], iteration_bounds = array<i64: 2, 2>, scalar_prefetch = 0 : i64, scratch_operands = 0 : i64, tpu.core_type = #tpu.core_type<tc>, window_params = [{transform_indices = @transform_0, window_bounds = array<i64: 1, 128, 128>}, {transform_indices = @transform_1, window_bounds = array<i64: 1, 128, 1>}, {transform_indices = @transform_2, window_bounds = array<i64: 1, 128, 1>}]} {
    %c0_i32 = arith.constant 0 : i32
    %0 = arith.cmpi eq, %arg1, %c0_i32 : i32
    %1 = arith.extui %0 : i1 to i32
    %c0_i32_0 = arith.constant 0 : i32
    %2 = arith.cmpi ne, %1, %c0_i32_0 : i32
    scf.if %2 {
      %cst_16 = arith.constant 0.000000e+00 : f32
      %22 = vector.broadcast %cst_16 : f32 to vector<128x1xf32>
      %c0_17 = arith.constant 0 : index
      %c0_18 = arith.constant 0 : index
      %c0_19 = arith.constant 0 : index
      %23 = vector.load %arg3[%c0_17, %c0_18, %c0_19] : memref<1x128x1xf32, #tpu.memory_space<vmem>>, vector<1x128x1xf32>
      %24 = vector.shape_cast %23 : vector<1x128x1xf32> to vector<128x1xf32>
      %25 = vector.shape_cast %22 : vector<128x1xf32> to vector<1x128x1xf32>
      tpu.vector_store %arg3[%c0_17, %c0_18, %c0_19], %25 {strides = array<i32>} : memref<1x128x1xf32, #tpu.memory_space<vmem>>, vector<1x128x1xf32>,
      %cst_20 = arith.constant 0.000000e+00 : f32
      %26 = vector.broadcast %cst_20 : f32 to vector<128x1xf32>
      %c0_21 = arith.constant 0 : index
      %c0_22 = arith.constant 0 : index
      %c0_23 = arith.constant 0 : index
      %27 = vector.load %arg4[%c0_21, %c0_22, %c0_23] : memref<1x128x1xf32, #tpu.memory_space<vmem>>, vector<1x128x1xf32>
      %28 = vector.shape_cast %27 : vector<1x128x1xf32> to vector<128x1xf32>
      %29 = vector.shape_cast %26 : vector<128x1xf32> to vector<1x128x1xf32>
      tpu.vector_store %arg4[%c0_21, %c0_22, %c0_23], %29 {strides = array<i32>} : memref<1x128x1xf32, #tpu.memory_space<vmem>>, vector<1x128x1xf32>,
    } else {
    }
    %c0 = arith.constant 0 : index
    %c0_1 = arith.constant 0 : index
    %c0_2 = arith.constant 0 : index
    %3 = vector.load %arg2[%c0, %c0_1, %c0_2] : memref<1x128x128xf32, #tpu.memory_space<vmem>>, vector<1x128x128xf32>
    %4 = vector.shape_cast %3 : vector<1x128x128xf32> to vector<128x128xf32>
    %c0_3 = arith.constant 0 : index
    %c0_4 = arith.constant 0 : index
    %c0_5 = arith.constant 0 : index
    %5 = vector.load %arg3[%c0_3, %c0_4, %c0_5] : memref<1x128x1xf32, #tpu.memory_space<vmem>>, vector<1x128x1xf32>
    %6 = vector.shape_cast %5 : vector<1x128x1xf32> to vector<128x1xf32>
    %cst = arith.constant dense<0.000000e+00> : vector<128xf32>
    %7 = vector.multi_reduction <add>, %4, %cst [1] : vector<128x128xf32> to vector<128xf32>
    %8 = vector.shape_cast %7 : vector<128xf32> to vector<128x1xf32>
    %9 = arith.addf %6, %8 : vector<128x1xf32>
    %c0_6 = arith.constant 0 : index
    %c0_7 = arith.constant 0 : index
    %c0_8 = arith.constant 0 : index
    %10 = vector.load %arg3[%c0_6, %c0_7, %c0_8] : memref<1x128x1xf32, #tpu.memory_space<vmem>>, vector<1x128x1xf32>
    %11 = vector.shape_cast %10 : vector<1x128x1xf32> to vector<128x1xf32>
    %12 = vector.shape_cast %9 : vector<128x1xf32> to vector<1x128x1xf32>
    tpu.vector_store %arg3[%c0_6, %c0_7, %c0_8], %12 {strides = array<i32>} : memref<1x128x1xf32, #tpu.memory_space<vmem>>, vector<1x128x1xf32>,
    %c0_9 = arith.constant 0 : index
    %c0_10 = arith.constant 0 : index
    %c0_11 = arith.constant 0 : index
    %13 = vector.load %arg4[%c0_9, %c0_10, %c0_11] : memref<1x128x1xf32, #tpu.memory_space<vmem>>, vector<1x128x1xf32>
    %14 = vector.shape_cast %13 : vector<1x128x1xf32> to vector<128x1xf32>
    %15 = arith.mulf %4, %4 : vector<128x128xf32>
    %cst_12 = arith.constant dense<0.000000e+00> : vector<128xf32>
    %16 = vector.multi_reduction <add>, %15, %cst_12 [1] : vector<128x128xf32> to vector<128xf32>
    %17 = vector.shape_cast %16 : vector<128xf32> to vector<128x1xf32>
    %18 = arith.addf %14, %17 : vector<128x1xf32>
    %c0_13 = arith.constant 0 : index
    %c0_14 = arith.constant 0 : index
    %c0_15 = arith.constant 0 : index
    %19 = vector.load %arg4[%c0_13, %c0_14, %c0_15] : memref<1x128x1xf32, #tpu.memory_space<vmem>>, vector<1x128x1xf32>
    %20 = vector.shape_cast %19 : vector<1x128x1xf32> to vector<128x1xf32>
    %21 = vector.shape_cast %18 : vector<128x1xf32> to vector<1x128x1xf32>
    tpu.vector_store %arg4[%c0_13, %c0_14, %c0_15], %21 {strides = array<i32>} : memref<1x128x1xf32, #tpu.memory_space<vmem>>, vector<1x128x1xf32>,
    return
  }
  func.func @transform_0(%arg0: i32, %arg1: i32) -> (i32, i32, i32) {
    %c0_i32 = arith.constant 0 : i32
    %c0_i32_0 = arith.constant 0 : i32
    return %arg0, %c0_i32, %arg1 : i32, i32, i32
  }
  func.func @transform_1(%arg0: i32, %arg1: i32) -> (i32, i32, i32) {
    %c0_i32 = arith.constant 0 : i32
    %c0_i32_0 = arith.constant 0 : i32
    %c0_i32_1 = arith.constant 0 : i32
    return %arg0, %c0_i32, %c0_i32_0 : i32, i32, i32
  }
  func.func @transform_2(%arg0: i32, %arg1: i32) -> (i32, i32, i32) {
    %c0_i32 = arith.constant 0 : i32
    %c0_i32_0 = arith.constant 0 : i32
    %c0_i32_1 = arith.constant 0 : i32
    return %arg0, %c0_i32, %c0_i32_0 : i32, i32, i32
  }
}

</mosaic_0001>

<bundles_post_ra>
// kernel: tpu_custom_call.1
= control target key start
LH: loop header
LB: loop body
LE: loop exit
PB: predicated region body
PF: predicated region fallthrough
CT: control target
= control target key end

     0   :  { %8 = vsyncpa [#allocation3], 0  ;;  %s1083_s0 = inlined_call_operand.hbm [shape: f32[2,128,256], index: 0, kind: input, shape index: {}]   ;;  %s1084_s1 = inlined_call_operand.vmem [shape: f32[2,128,1], index: 1, kind: output, shape index: {0}]   ;;  %s1085_s2 = inlined_call_operand.vmem [shape: f32[2,128,1], index: 2, kind: output, shape index: {1}]  }
   0x1   :  { %10 = vsyncpa [#allocation3 + $0x1], 0  ;;  %s746_s9 = smov 0   ;;  %s748_s10 = smov 0  }
   0x2   :  { %s750_s11 = smov 0   ;;  %s752_s12 = smov 0  }
   0x3   :  { %s754_s13 = smov 0   ;;  %s756_s14 = smov 0  }
   0x4   :  { %s758_s15 = smov 0   ;;  %s760_s16 = smov 0  }
   0x5 LB: > { %s535_s17 = sadd.s32 4294967295, %s724_s16   ;;  %s25_s18 = sadd.s32 1, %s716_s14  ;;  %s724_s16 = sphi %s760_s16, %s16_s16   ;;  %s720_s15 = sphi %s758_s15, %s1096_s15   ;;  %s716_s14 = sphi %s756_s14, %s1095_s14   ;;  %s712_s13 = sphi %s754_s13, %s1094_s13   ;;  %s708_s12 = sphi %s752_s12, %s1093_s12   ;;  %s704_s11 = sphi %s750_s11, %s1092_s11   ;;  %s700_s10 = sphi %s748_s10, %s1091_s10   ;;  %s696_s9 = sphi %s746_s9, %s1090_s9  }
   0x6   : > { %p26_p0 = scmp.ge.s32.totalorder %s25_s18, 2  ;;  %s28_s19 = sadd.s32 1, %s720_s15 }
   0x7   : > { %s37_s20 = sadd.s32 1, %s704_s11  ;;  %p44_p1 = scmp.ne.s32.totalorder %s704_s11, %s700_s10 }
   0x8   : > { %s1098_s18 = smov (%p26_p0, %s25_s18), 0  ;;  %s1100_s19 = smov (!%p26_p0, %s28_s19), %s720_s15 }
   0x9   : > { %s33_s21 = ssub.s32 %s716_s14, %s1098_s18  ;;  %p45_p2 = scmp.eq.s32.totalorder %s724_s16, 0 }
   0xa   : > { %p30_p3 = scmp.ge.s32.totalorder %s1100_s19, 2  ;;  %p50_p4 = scmp.ne.s32.totalorder %s700_s10, %s696_s9 }
   0xb   : > { %p797_p5 = por %p45_p2, %p44_p1  ;;  %p51_p6 = scmp.eq.s32.totalorder %s535_s17, 0 }
   0xc   : > { %s1102_s19 = smov (%p30_p3, %s1100_s19), 0  ;;  %p559_p8 = scmp.lt.s32.totalorder %s724_s16, 4 }
   0xd   : > { %p803_p7 = por %p51_p6, %p50_p4  ;;  %s32_s24 = ssub.s32 %s720_s15, %s1102_s19 }
   0xe   : > { %s34_s25 = sor.u32 %s33_s21, %s32_s24  ;;  %s126_s26 = sand.u32 1, %s704_s11  }
   0xf   : > { %p35_p9 = scmp.eq.s32.totalorder %s34_s25, 0  ;;  %s539_s27 = sshll.u32 %s126_s26, 7 }
  0x10   : > { %s540_s28 = sshll.u32 %s720_s15, 5  ;;  %s130_s4 = scalar_lea.vmem [#allocation2], %s539_s27 }
  0x11   : > { %s813_s29 = scalar_select %p35_p9, %s704_s11, %s37_s20  }
  0x12   : > { %s135_s30 = sadd.s32 %s716_s14, %s540_s28  ;;  %s138_s5 = sshll.u32 %s130_s4, 4  ;;  %s821_s5 = int_to_ptr.vmem [resolvable:$true] %s138_s5 }
  0x13   : > { %s541_s3 = sshll.u32 %s135_s30, 7  ;;  %p827_p10 = pnand %p559_p8, %p797_p5 }
  0x14   : > { %s819_s8 = scalar_lea.hbm %s1083_s0, %s541_s3  ;;  %s832_s17 = scalar_lea.sflag [#allocation3], %s126_s26 }
  0x15   : > { %s628_s20 = scalar_lea.hbm %s819_s8, 2048  ;;  %p630_p13 = pneg %p827_p10 }
  0x16   : > { %p629_p12 = scmp.ne.s32.totalorder %s819_s8, %s628_s20  ;;  %s633_s24 = scalar_lea.hbm %s1083_s0, 8192 }
  0x17   : > { %p634_p2 = scmp.lt.u32.totalorder %s819_s8, %s1083_s0  ;;  %p635_p3 = scmp.lt.u32.totalorder %s633_s24, %s628_s20 }
  0x18   : > { %p631_p0 = pnand %p630_p13, %p629_p12  ;;  %p637_p5 = scmp.lt.u32.totalorder %s628_s20, %s819_s8 }
  0x19   : > { %p636_p4 = por %p635_p3, %p634_p2 }
  0x1a   : > { %p632_p1 = pneg %p631_p0 }
  0x1b   : > { %p638_p6 = por %p637_p5, %p636_p4 }
  0x1d   : > { %p639_p8 = pnand %p638_p6, %p632_p1 }
  0x1f   : > { %642 = shalt.err (!%p639_p8)
}
  0x20   : > { %s643_s26 = scalar_lea.vmem %s821_s5, 2048  ;;  %s726_s28 = smov [#allocation2]  }
  0x21   : > { %p644_p9 = scmp.ne.s32.totalorder %s821_s5, %s643_s26  ;;  %s648_s30 = sshll.u32 %s726_s28, 4  ;;  %s649_s30 = int_to_ptr.vmem [resolvable:$false] %s648_s30 }
  0x22   : > { %s650_s3 = scalar_lea.vmem %s649_s30, 4096  ;;  %p651_p11 = scmp.lt.s32.totalorder %s821_s5, %s649_s30 }
  0x23   : > { %p646_p12 = pnand %p644_p9, %p630_p13  ;;  %p652_p2 = scmp.lt.s32.totalorder %s650_s3, %s643_s26 }
  0x25   : > { %p647_p0 = pneg %p646_p12  ;;  %p653_p3 = por %p652_p2, %p651_p11 }
  0x27   : > { %p654_p4 = pnand %p653_p3, %p647_p0 }
  0x29   : > { %657 = shalt.err (!%p654_p4)
}
  0x2a   : > { %s727_s4 = smov 256   ;;  %s728_s6 = smov 128  }
  0x2b   : > { %s729_s7 = smov 8   ;;  %p146_p13 = scmp.lt.s32.totalorder %s724_s16, 5 }
  0x2c   : > { %558 = dma.hbm_to_vmem [thread:$0]  (!%p827_p10), %s819_s8, 2048, %s821_s5, %s832_s17, %s727_s4, %s728_s6, %s729_s7  }
  0x2d   : > { %p1089_p1 = scmp.ge.s32.totalorder %s724_s16, 1 }
  0x2f   : > { %p147_p5 = pnand %p1089_p1, %p146_p13 }
  0x30   : > { %s152_s20 = sand.u32 (!%p147_p5), 1, %s700_s10  }
  0x31   : > { %150 = sbr.rel (%p147_p5) target bundleno = 284 (0x11c), region = 24  ;;  %s543_s21 = sshll.u32 (!%p147_p5), %s152_s20, 7 }
  0x32   : > { %s153_s22 = scalar_lea.sflag (!%p147_p5), [#allocation3], %s152_s20  ;;  %s864_s24 = scalar_lea.vmem (!%p147_p5), [#allocation2], %s543_s21 }
  0x38   : > { %691 = dma.done.wait (%p803_p7), %s153_s22, 2048  }
  0x39   : > { %693 = vsyncadd (%p803_p7), %s153_s22, 4294965248  ;;  %p182_p11 = scmp.lt.s32.totalorder %s712_s13, 1  ;;  %p548_p10 = scmp.ne.s32.totalorder %s708_s12, 0 }
  0x3a   : > { %vm196_vm0 = vcmask (!%p548_p10), 7168   ;;  %v730_v0 = vmov (!%p548_p10), 0.0  }
  0x3b   : > { %s1104_s13 = smov (!%p182_p11, %s712_s13), 1  ;;  %195 = sbr.rel (%p548_p10) target bundleno = 78 (0x4e), region = 32 }
  0x3c   : > { %s551_s5 = sshll.u32 %s1104_s13, 7 }
  0x3d   : > { %s875_s17 = scalar_lea.vmem %s1084_s1, %s551_s5  ;;  %s880_s26 = scalar_lea.vmem %s1085_s2, %s551_s5 }
  0x3e   : > { %197 = vst.msk [vmem:[%s875_s17] sm:$0xff] (!%p548_p10), %vm196_vm0, %v730_v0  ;;  %198 = vst.msk [vmem:[%s875_s17 + $0x8] sm:$0xff] (!%p548_p10), %vm196_vm0, %v730_v0 }
  0x3f   : > { %199 = vst.msk [vmem:[%s875_s17 + $0x10] sm:$0xff] (!%p548_p10), %vm196_vm0, %v730_v0  ;;  %200 = vst.msk [vmem:[%s875_s17 + $0x18] sm:$0xff] (!%p548_p10), %vm196_vm0, %v730_v0 }
  0x40   : > { %201 = vst.msk [vmem:[%s875_s17 + $0x20] sm:$0xff] (!%p548_p10), %vm196_vm0, %v730_v0  ;;  %202 = vst.msk [vmem:[%s875_s17 + $0x28] sm:$0xff] (!%p548_p10), %vm196_vm0, %v730_v0 }
  0x41   : > { %203 = vst.msk [vmem:[%s875_s17 + $0x30] sm:$0xff] (!%p548_p10), %vm196_vm0, %v730_v0  ;;  %204 = vst.msk [vmem:[%s875_s17 + $0x38] sm:$0xff] (!%p548_p10), %vm196_vm0, %v730_v0 }
  0x42   : > { %205 = vst.msk [vmem:[%s875_s17 + $0x40] sm:$0xff] %vm196_vm0, %v730_v0  ;;  %206 = vst.msk [vmem:[%s875_s17 + $0x48] sm:$0xff] %vm196_vm0, %v730_v0 }
  0x43   : > { %207 = vst.msk [vmem:[%s875_s17 + $0x50] sm:$0xff] %vm196_vm0, %v730_v0  ;;  %208 = vst.msk [vmem:[%s875_s17 + $0x58] sm:$0xff] %vm196_vm0, %v730_v0 }
  0x44   : > { %209 = vst.msk [vmem:[%s875_s17 + $0x60] sm:$0xff] %vm196_vm0, %v730_v0  ;;  %210 = vst.msk [vmem:[%s875_s17 + $0x68] sm:$0xff] %vm196_vm0, %v730_v0 }
  0x45   : > { %211 = vst.msk [vmem:[%s875_s17 + $0x70] sm:$0xff] %vm196_vm0, %v730_v0  ;;  %212 = vst.msk [vmem:[%s875_s17 + $0x78] sm:$0xff] %vm196_vm0, %v730_v0 }
  0x46   : > { %213 = vst.msk [vmem:[%s880_s26] sm:$0xff] %vm196_vm0, %v730_v0  ;;  %214 = vst.msk [vmem:[%s880_s26 + $0x8] sm:$0xff] %vm196_vm0, %v730_v0 }
  0x47   : > { %215 = vst.msk [vmem:[%s880_s26 + $0x10] sm:$0xff] %vm196_vm0, %v730_v0  ;;  %216 = vst.msk [vmem:[%s880_s26 + $0x18] sm:$0xff] %vm196_vm0, %v730_v0 }
  0x48   : > { %217 = vst.msk [vmem:[%s880_s26 + $0x20] sm:$0xff] %vm196_vm0, %v730_v0  ;;  %218 = vst.msk [vmem:[%s880_s26 + $0x28] sm:$0xff] %vm196_vm0, %v730_v0 }
  0x49   : > { %219 = vst.msk [vmem:[%s880_s26 + $0x30] sm:$0xff] %vm196_vm0, %v730_v0  ;;  %220 = vst.msk [vmem:[%s880_s26 + $0x38] sm:$0xff] %vm196_vm0, %v730_v0 }
  0x4a   : > { %221 = vst.msk [vmem:[%s880_s26 + $0x40] sm:$0xff] %vm196_vm0, %v730_v0  ;;  %222 = vst.msk [vmem:[%s880_s26 + $0x48] sm:$0xff] %vm196_vm0, %v730_v0 }
  0x4b   : > { %223 = vst.msk [vmem:[%s880_s26 + $0x50] sm:$0xff] %vm196_vm0, %v730_v0  ;;  %224 = vst.msk [vmem:[%s880_s26 + $0x58] sm:$0xff] %vm196_vm0, %v730_v0 }
  0x4c   : > { %225 = vst.msk [vmem:[%s880_s26 + $0x60] sm:$0xff] %vm196_vm0, %v730_v0  ;;  %226 = vst.msk [vmem:[%s880_s26 + $0x68] sm:$0xff] %vm196_vm0, %v730_v0 }
  0x4d   : > { %227 = vst.msk [vmem:[%s880_s26 + $0x70] sm:$0xff] %vm196_vm0, %v730_v0  ;;  %228 = vst.msk [vmem:[%s880_s26 + $0x78] sm:$0xff] %vm196_vm0, %v730_v0 }
  0x4e PF: > { %v231_v1 = vld [vmem:[%s864_s24 + $0x10] sm:$0xff]  ;;  %v229_v2 = vld [vmem:[%s864_s24] sm:$0xff]  ;;  %v232_v3 = vld [vmem:[%s864_s24 + $0x18] sm:$0xff]  ;;  %vm309_vm1 = vcmask 7168  }
  0x4f   : > { %265 = vadd.xlane.f32.xlu1 %v231_v1  ;;  %261 = vadd.xlane.f32.xlu0 %v229_v2  ;;  %v230_v4 = vld [vmem:[%s864_s24 + $0x8] sm:$0xff]  ;;  %v233_v6 = vld [vmem:[%s864_s24 + $0x20] sm:$0xff]  ;;  %v236_v7 = vld [vmem:[%s864_s24 + $0x38] sm:$0xff]  ;;  %v342_v18 = vmul.f32 %v229_v2, %v229_v2  ;;  %v345_v19 = vmul.f32 %v232_v3, %v232_v3  ;;  %v344_v20 = vmul.f32 %v231_v1, %v231_v1 }
  0x50   : > { %v234_v5 = vld [vmem:[%s864_s24 + $0x28] sm:$0xff]  ;;  %v235_v8 = vld [vmem:[%s864_s24 + $0x30] sm:$0xff]  ;;  %v237_v10 = vld [vmem:[%s864_s24 + $0x40] sm:$0xff]  ;;  %v343_v17 = vmul.f32 %v230_v4, %v230_v4  ;;  %v346_v22 = vmul.f32 %v233_v6, %v233_v6  ;;  %v349_v23 = vmul.f32 %v236_v7, %v236_v7 }
  0x51   : > { %v238_v9 = vld [vmem:[%s864_s24 + $0x48] sm:$0xff]  ;;  %v240_v11 = vld [vmem:[%s864_s24 + $0x58] sm:$0xff]  ;;  %v239_v12 = vld [vmem:[%s864_s24 + $0x50] sm:$0xff]  ;;  %v347_v21 = vmul.f32 %v234_v5, %v234_v5  ;;  %v348_v24 = vmul.f32 %v235_v8, %v235_v8  ;;  %v350_v26 = vmul.f32 %v237_v10, %v237_v10 }
  0x52   : > { %v242_v13 = vld [vmem:[%s864_s24 + $0x68] sm:$0xff]  ;;  %v241_v14 = vld [vmem:[%s864_s24 + $0x60] sm:$0xff]  ;;  %v244_v15 = vld [vmem:[%s864_s24 + $0x78] sm:$0xff]  ;;  %v351_v25 = vmul.f32 %v238_v9, %v238_v9  ;;  %v353_v27 = vmul.f32 %v240_v11, %v240_v11  ;;  %v352_v28 = vmul.f32 %v239_v12, %v239_v12 }
  0x53   : > { %267 = vadd.xlane.f32.xlu1 %v232_v3  ;;  %263 = vadd.xlane.f32.xlu0 %v230_v4  ;;  %v243_v16 = vld [vmem:[%s864_s24 + $0x70] sm:$0xff]  ;;  %v355_v29 = vmul.f32 %v242_v13, %v242_v13  ;;  %v354_v30 = vmul.f32 %v241_v14, %v241_v14  ;;  %v357_v31 = vmul.f32 %v244_v15, %v244_v15  ;;  %v245_v34 = vld [vmem:[%s875_s17] sm:$0xff]  ;;  %v248_v39 = vld [vmem:[%s875_s17 + $0x18] sm:$0xff] }
  0x54   : > { %v356_v32 = vmul.f32 %v243_v16, %v243_v16  ;;  %v247_v33 = vld [vmem:[%s875_s17 + $0x10] sm:$0xff]  ;;  %v246_v40 = vld [vmem:[%s875_s17 + $0x8] sm:$0xff]  ;;  %v249_v46 = vld [vmem:[%s875_s17 + $0x20] sm:$0xff] }
  0x55   : > { %v250_v45 = vld [vmem:[%s875_s17 + $0x28] sm:$0xff]  ;;  %v252_v51 = vld [vmem:[%s875_s17 + $0x38] sm:$0xff]  ;;  %v251_v52 = vld [vmem:[%s875_s17 + $0x30] sm:$0xff] }
  0x56   : > { %v254_v57 = vld [vmem:[%s875_s17 + $0x48] sm:$0xff]  ;;  %v253_v58 = vld [vmem:[%s875_s17 + $0x40] sm:$0xff]  ;;  %v256_v63 = vld [vmem:[%s875_s17 + $0x58] sm:$0xff] }
  0x57   : > { %271 = vadd.xlane.f32.xlu1 %v234_v5  ;;  %269 = vadd.xlane.f32.xlu0 %v233_v6  ;;  %v255_v0 = vld [vmem:[%s875_s17 + $0x50] sm:$0xff]  ;;  %v258_v5 = vld [vmem:[%s875_s17 + $0x68] sm:$0xff]  ;;  %v257_v6 = vld [vmem:[%s875_s17 + $0x60] sm:$0xff] }
  0x5b   : > { %275 = vadd.xlane.f32.xlu1 %v236_v7  ;;  %273 = vadd.xlane.f32.xlu0 %v235_v8 }
  0x5f   : > { %279 = vadd.xlane.f32.xlu1 %v238_v9  ;;  %277 = vadd.xlane.f32.xlu0 %v237_v10 }
  0x63   : > { %283 = vadd.xlane.f32.xlu1 %v240_v11  ;;  %281 = vadd.xlane.f32.xlu0 %v239_v12  ;;  %v260_v11 = vld [vmem:[%s875_s17 + $0x78] sm:$0xff]  ;;  %v259_v12 = vld [vmem:[%s875_s17 + $0x70] sm:$0xff] }
  0x67   : > { %287 = vadd.xlane.f32.xlu1 %v242_v13  ;;  %285 = vadd.xlane.f32.xlu0 %v241_v14 }
  0x6b   : > { %291 = vadd.xlane.f32.xlu1 %v244_v15  ;;  %289 = vadd.xlane.f32.xlu0 %v243_v16 }
  0x6f   : > { %360 = vadd.xlane.f32.xlu1 %v343_v17  ;;  %358 = vadd.xlane.f32.xlu0 %v342_v18  ;;  %v327_v17 = vld [vmem:[%s880_s26 + $0x8] sm:$0xff]  ;;  %v326_v18 = vld [vmem:[%s880_s26] sm:$0xff] }
  0x73   : > { %364 = vadd.xlane.f32.xlu1 %v345_v19  ;;  %362 = vadd.xlane.f32.xlu0 %v344_v20 }
  0x77   : > { %368 = vadd.xlane.f32.xlu1 %v347_v21  ;;  %366 = vadd.xlane.f32.xlu0 %v346_v22 }
  0x7b   : > { %372 = vadd.xlane.f32.xlu1 %v349_v23  ;;  %370 = vadd.xlane.f32.xlu0 %v348_v24  ;;  %v329_v23 = vld [vmem:[%s880_s26 + $0x18] sm:$0xff]  ;;  %v328_v24 = vld [vmem:[%s880_s26 + $0x10] sm:$0xff] }
  0x7f   : > { %376 = vadd.xlane.f32.xlu1 %v351_v25  ;;  %374 = vadd.xlane.f32.xlu0 %v350_v26 }
  0x83   : > { %380 = vadd.xlane.f32.xlu1 %v353_v27  ;;  %378 = vadd.xlane.f32.xlu0 %v352_v28 }
  0x87   : > { %384 = vadd.xlane.f32.xlu1 %v355_v29  ;;  %382 = vadd.xlane.f32.xlu0 %v354_v30  ;;  %v331_v29 = vld [vmem:[%s880_s26 + $0x28] sm:$0xff]  ;;  %v330_v30 = vld [vmem:[%s880_s26 + $0x20] sm:$0xff] }
  0x8b   : > { %388 = vadd.xlane.f32.xlu1 %v357_v31  ;;  %386 = vadd.xlane.f32.xlu0 %v356_v32 }
  0xdc   : > { %v266_v35 = vpop.xlane.xlu1 %265  ;;  %v262_v36 = vpop.xlane.xlu0 %261 }
  0xdd   : > { %v295_v37 = vadd.f32 %v266_v35, %v247_v33  ;;  %v293_v38 = vadd.f32 %v262_v36, %v245_v34  ;;  %v333_v35 = vld [vmem:[%s880_s26 + $0x38] sm:$0xff]  ;;  %v332_v36 = vld [vmem:[%s880_s26 + $0x30] sm:$0xff] }
  0xdf   : > { %312 = vst.msk [vmem:[%s875_s17 + $0x10] sm:$0xff] %vm309_vm1, %v295_v37  ;;  %310 = vst.msk [vmem:[%s875_s17] sm:$0xff] %vm309_vm1, %v293_v38 }
  0xe0   : > { %v268_v41 = vpop.xlane.xlu1 %267  ;;  %v264_v42 = vpop.xlane.xlu0 %263 }
  0xe1   : > { %v296_v43 = vadd.f32 %v268_v41, %v248_v39  ;;  %v294_v44 = vadd.f32 %v264_v42, %v246_v40  ;;  %v335_v41 = vld [vmem:[%s880_s26 + $0x48] sm:$0xff]  ;;  %v334_v42 = vld [vmem:[%s880_s26 + $0x40] sm:$0xff] }
  0xe3   : > { %313 = vst.msk [vmem:[%s875_s17 + $0x18] sm:$0xff] %vm309_vm1, %v296_v43  ;;  %311 = vst.msk [vmem:[%s875_s17 + $0x8] sm:$0xff] %vm309_vm1, %v294_v44 }
  0xe4   : > { %v272_v47 = vpop.xlane.xlu1 %271  ;;  %v270_v48 = vpop.xlane.xlu0 %269 }
  0xe5   : > { %v298_v49 = vadd.f32 %v272_v47, %v250_v45  ;;  %v297_v50 = vadd.f32 %v270_v48, %v249_v46  ;;  %v337_v47 = vld [vmem:[%s880_s26 + $0x58] sm:$0xff]  ;;  %v336_v48 = vld [vmem:[%s880_s26 + $0x50] sm:$0xff] }
  0xe7   : > { %315 = vst.msk [vmem:[%s875_s17 + $0x28] sm:$0xff] %vm309_vm1, %v298_v49  ;;  %314 = vst.msk [vmem:[%s875_s17 + $0x20] sm:$0xff] %vm309_vm1, %v297_v50 }
  0xe8   : > { %v276_v53 = vpop.xlane.xlu1 %275  ;;  %v274_v54 = vpop.xlane.xlu0 %273 }
  0xe9   : > { %v300_v55 = vadd.f32 %v276_v53, %v252_v51  ;;  %v299_v56 = vadd.f32 %v274_v54, %v251_v52  ;;  %v339_v53 = vld [vmem:[%s880_s26 + $0x68] sm:$0xff]  ;;  %v338_v54 = vld [vmem:[%s880_s26 + $0x60] sm:$0xff] }
  0xeb   : > { %317 = vst.msk [vmem:[%s875_s17 + $0x38] sm:$0xff] %vm309_vm1, %v300_v55  ;;  %316 = vst.msk [vmem:[%s875_s17 + $0x30] sm:$0xff] %vm309_vm1, %v299_v56 }
  0xec   : > { %v280_v59 = vpop.xlane.xlu1 %279  ;;  %v278_v60 = vpop.xlane.xlu0 %277 }
  0xed   : > { %v302_v61 = vadd.f32 %v280_v59, %v254_v57  ;;  %v301_v62 = vadd.f32 %v278_v60, %v253_v58  ;;  %v341_v59 = vld [vmem:[%s880_s26 + $0x78] sm:$0xff]  ;;  %v340_v60 = vld [vmem:[%s880_s26 + $0x70] sm:$0xff] }
  0xef   : > { %319 = vst.msk [vmem:[%s875_s17 + $0x48] sm:$0xff] %vm309_vm1, %v302_v61  ;;  %318 = vst.msk [vmem:[%s875_s17 + $0x40] sm:$0xff] %vm309_vm1, %v301_v62 }
  0xf0   : > { %v284_v1 = vpop.xlane.xlu1 %283  ;;  %v282_v2 = vpop.xlane.xlu0 %281 }
  0xf1   : > { %v304_v3 = vadd.f32 %v284_v1, %v256_v63  ;;  %v303_v4 = vadd.f32 %v282_v2, %v255_v0 }
  0xf3   : > { %321 = vst.msk [vmem:[%s875_s17 + $0x58] sm:$0xff] %vm309_vm1, %v304_v3  ;;  %320 = vst.msk [vmem:[%s875_s17 + $0x50] sm:$0xff] %vm309_vm1, %v303_v4 }
  0xf4   : > { %v288_v7 = vpop.xlane.xlu1 %287  ;;  %v286_v8 = vpop.xlane.xlu0 %285 }
  0xf5   : > { %v306_v9 = vadd.f32 %v288_v7, %v258_v5  ;;  %v305_v10 = vadd.f32 %v286_v8, %v257_v6 }
  0xf7   : > { %323 = vst.msk [vmem:[%s875_s17 + $0x68] sm:$0xff] %vm309_vm1, %v306_v9  ;;  %322 = vst.msk [vmem:[%s875_s17 + $0x60] sm:$0xff] %vm309_vm1, %v305_v10 }
  0xf8   : > { %v292_v13 = vpop.xlane.xlu1 %291  ;;  %v290_v14 = vpop.xlane.xlu0 %289 }
  0xf9   : > { %v308_v15 = vadd.f32 %v292_v13, %v260_v11  ;;  %v307_v16 = vadd.f32 %v290_v14, %v259_v12 }
  0xfb   : > { %325 = vst.msk [vmem:[%s875_s17 + $0x78] sm:$0xff] %vm309_vm1, %v308_v15  ;;  %324 = vst.msk [vmem:[%s875_s17 + $0x70] sm:$0xff] %vm309_vm1, %v307_v16 }
  0xfc   : > { %v361_v19 = vpop.xlane.xlu1 %360  ;;  %v359_v20 = vpop.xlane.xlu0 %358 }
  0xfd   : > { %v391_v21 = vadd.f32 %v361_v19, %v327_v17  ;;  %v390_v22 = vadd.f32 %v359_v20, %v326_v18 }
  0xff   : > { %407 = vst.msk [vmem:[%s880_s26 + $0x8] sm:$0xff] %vm309_vm1, %v391_v21  ;;  %406 = vst.msk [vmem:[%s880_s26] sm:$0xff] %vm309_vm1, %v390_v22 }
 0x100   : > { %v365_v25 = vpop.xlane.xlu1 %364  ;;  %v363_v26 = vpop.xlane.xlu0 %362 }
 0x101   : > { %v393_v27 = vadd.f32 %v365_v25, %v329_v23  ;;  %v392_v28 = vadd.f32 %v363_v26, %v328_v24 }
 0x103   : > { %409 = vst.msk [vmem:[%s880_s26 + $0x18] sm:$0xff] %vm309_vm1, %v393_v27  ;;  %408 = vst.msk [vmem:[%s880_s26 + $0x10] sm:$0xff] %vm309_vm1, %v392_v28 }
 0x104   : > { %v369_v31 = vpop.xlane.xlu1 %368  ;;  %v367_v32 = vpop.xlane.xlu0 %366 }
 0x105   : > { %v395_v33 = vadd.f32 %v369_v31, %v331_v29  ;;  %v394_v34 = vadd.f32 %v367_v32, %v330_v30 }
 0x107   : > { %411 = vst.msk [vmem:[%s880_s26 + $0x28] sm:$0xff] %vm309_vm1, %v395_v33  ;;  %410 = vst.msk [vmem:[%s880_s26 + $0x20] sm:$0xff] %vm309_vm1, %v394_v34 }
 0x108   : > { %v373_v37 = vpop.xlane.xlu1 %372  ;;  %v371_v38 = vpop.xlane.xlu0 %370 }
 0x109   : > { %v397_v39 = vadd.f32 %v373_v37, %v333_v35  ;;  %v396_v40 = vadd.f32 %v371_v38, %v332_v36 }
 0x10b   : > { %413 = vst.msk [vmem:[%s880_s26 + $0x38] sm:$0xff] %vm309_vm1, %v397_v39  ;;  %412 = vst.msk [vmem:[%s880_s26 + $0x30] sm:$0xff] %vm309_vm1, %v396_v40 }
 0x10c   : > { %v377_v43 = vpop.xlane.xlu1 %376  ;;  %v375_v44 = vpop.xlane.xlu0 %374 }
 0x10d   : > { %v399_v45 = vadd.f32 %v377_v43, %v335_v41  ;;  %v398_v46 = vadd.f32 %v375_v44, %v334_v42 }
 0x10f   : > { %415 = vst.msk [vmem:[%s880_s26 + $0x48] sm:$0xff] %vm309_vm1, %v399_v45  ;;  %414 = vst.msk [vmem:[%s880_s26 + $0x40] sm:$0xff] %vm309_vm1, %v398_v46 }
 0x110   : > { %v381_v49 = vpop.xlane.xlu1 %380  ;;  %v379_v50 = vpop.xlane.xlu0 %378 }
 0x111   : > { %v401_v51 = vadd.f32 %v381_v49, %v337_v47  ;;  %v400_v52 = vadd.f32 %v379_v50, %v336_v48 }
 0x113   : > { %417 = vst.msk [vmem:[%s880_s26 + $0x58] sm:$0xff] %vm309_vm1, %v401_v51  ;;  %416 = vst.msk [vmem:[%s880_s26 + $0x50] sm:$0xff] %vm309_vm1, %v400_v52 }
 0x114   : > { %v385_v55 = vpop.xlane.xlu1 %384  ;;  %v383_v56 = vpop.xlane.xlu0 %382 }
 0x115   : > { %v403_v57 = vadd.f32 %v385_v55, %v339_v53  ;;  %v402_v58 = vadd.f32 %v383_v56, %v338_v54 }
 0x117   : > { %419 = vst.msk [vmem:[%s880_s26 + $0x68] sm:$0xff] %vm309_vm1, %v403_v57  ;;  %418 = vst.msk [vmem:[%s880_s26 + $0x60] sm:$0xff] %vm309_vm1, %v402_v58 }
 0x118   : > { %v389_v61 = vpop.xlane.xlu1 %388  ;;  %v387_v62 = vpop.xlane.xlu0 %386 }
 0x119   : > { %v405_v63 = vadd.f32 %v389_v61, %v341_v59  ;;  %v404_v0 = vadd.f32 %v387_v62, %v340_v60 }
 0x11b   : > { %421 = vst.msk [vmem:[%s880_s26 + $0x78] sm:$0xff] %vm309_vm1, %v405_v63  ;;  %420 = vst.msk [vmem:[%s880_s26 + $0x70] sm:$0xff] %vm309_vm1, %v404_v0 }
 0x11c PF: > { %s16_s16 = sadd.s32 1, %s724_s16   ;;  %s1090_s9 = smov %s700_s10 }
 0x11d   : > { %p13_p7 = scmp.ge.s32.totalorder %s16_s16, 6   ;;  %s1091_s10 = smov %s704_s11 }
 0x11e   : > { %s1092_s11 = smov %s813_s29  ;;  %s1093_s12 = smov %s716_s14 }
 0x11f   : > { %s1094_s13 = smov %s720_s15  ;;  %s1095_s14 = smov %s1098_s18 }
 0x120   : > { %s1096_s15 = smov %s1102_s19  ;;  %15 = sbr.rel (!%p13_p7) target bundleno = 5 (0x5), region = 80 }
 0x127   :  { %459 = vsyncpa [#allocation3], 1 }
 0x128   :  { %461 = vsyncpa [#allocation3 + $0x1], 1 }

</bundles_post_ra>
